<compile_context>
chip_gen: v7x
topology: tpu7x:2x2x1
jax: 0.10.0
libtpu: 0.0.40
codegen_flags: <defaults>
</compile_context>

<pallas_src>
import jax
import jax.numpy as jnp
from jax.experimental import pallas as pl
from jax.experimental.pallas import tpu as pltpu


def _rescale_kernel(x_ref, scale_ref, o_ref):
    # x_ref: (tn, tc), scale_ref: (1, tc), o_ref: (tn, tc)
    # (1, tc) broadcasts over the sublane axis — a cheap vreg sublane broadcast.
    o_ref[...] = x_ref[...] * scale_ref[...]


# Tile-size caps (f32: 256 * 2048 * 4 B = 2 MiB per block; with double-buffered
# x + out plus the tiny scale buffers this stays well under the 16 MiB v5e /
# 32 MiB v6e-v7x scoped VMEM defaults).
_ROW_TILE = 256
_COL_TILE = 2048


def learned_rescale_1db(x: jax.Array, scale_a: jax.Array) -> jax.Array:
    """out = x * scale_a, broadcast over the batch dimension (x: (N,C,L), scale_a: (C,L))."""
    n, c, l = x.shape
    assert scale_a.shape == (c, l), f"scale_a must be (C, L)={(c, l)}, got {scale_a.shape}"

    f = c * l
    x2 = x.reshape(n, f)                       # lane-dense last dim
    s2 = scale_a.reshape(1, f).astype(x.dtype)

    # Block sizes: full extent when small (always legal), otherwise multiples
    # of (8, 128) so the (8, 128) layout rule is satisfied; Pallas pads ragged
    # trailing blocks, which is fine for a pure elementwise op.
    tn = n if n <= _ROW_TILE else _ROW_TILE
    tc = f if f <= _COL_TILE else _COL_TILE
    grid = (pl.cdiv(n, tn), pl.cdiv(f, tc))

    out2 = pl.pallas_call(
        _rescale_kernel,
        out_shape=jax.ShapeDtypeStruct((n, f), x.dtype),
        grid_spec=pltpu.PrefetchScalarGridSpec(
            num_scalar_prefetch=0,
            grid=grid,
            in_specs=[
                pl.BlockSpec((tn, tc), lambda i, j: (i, j)),   # x tile
                pl.BlockSpec((1, tc), lambda i, j: (0, j)),    # scale tile (row-invariant)
            ],
            out_specs=pl.BlockSpec((tn, tc), lambda i, j: (i, j)),
        ),
        compiler_params=pltpu.CompilerParams(
            dimension_semantics=("parallel", "parallel"),
            vmem_limit_bytes=32 * 1024 * 1024,
        ),
    )(x2, s2)

    return out2.reshape(n, c, l)


def _reference(x, scale_a):
    return x * scale_a[None, :, :]


if __name__ == "__main__":
    key = jax.random.PRNGKey(0)

    # Case 1: small shapes consistent with a 1-D conv activation (N=2, C=4, L=16).
    N, C, L = 2, 4, 16
    k1, k2, k3, k4 = jax.random.split(key, 4)
    x = jax.random.normal(k1, (N, C, L), dtype=jnp.float32)
    # Module init fills scale_a with 1.0; perturb deterministically so the
    # broadcast multiply is actually exercised.
    scale_a = jnp.ones((C, L), dtype=jnp.float32) + 0.1 * jax.random.normal(
        k2, (C, L), dtype=jnp.float32
    )
    out = learned_rescale_1db(x, scale_a)
    jax.block_until_ready(out)
    assert out.shape == (N, C, L)
    assert jnp.allclose(out, _reference(x, scale_a), atol=1e-6, rtol=1e-6)

    # Case 2: slightly larger shapes so the column axis is actually tiled
    # (C*L = 3072 > 2048) and the padded trailing block path is exercised.
    N2, C2, L2 = 16, 32, 96
    x_b = jax.random.normal(k3, (N2, C2, L2), dtype=jnp.float32)
    scale_b = jnp.ones((C2, L2), dtype=jnp.float32) + 0.1 * jax.random.normal(
        k4, (C2, L2), dtype=jnp.float32
    )
    out_b = learned_rescale_1db(x_b, scale_b)
    jax.block_until_ready(out_b)
    assert out_b.shape == (N2, C2, L2)
    assert jnp.allclose(out_b, _reference(x_b, scale_b), atol=1e-6, rtol=1e-6)

    print("KERNEL_OK")
</pallas_src>

<mosaic_0001>
module attributes {stable_mosaic.version = 11 : i64} {
  func.func @_rescale_kernel(%arg0: i32, %arg1: i32, %arg2: memref<2x64xf32, #tpu.memory_space<vmem>>, %arg3: memref<1x64xf32, #tpu.memory_space<vmem>>, %arg4: memref<2x64xf32, #tpu.memory_space<vmem>>) attributes {dimension_semantics = [#tpu.dimension_semantics<parallel>, #tpu.dimension_semantics<parallel>], iteration_bounds = array<i64: 1, 1>, scalar_prefetch = 0 : i64, scratch_operands = 0 : i64, tpu.core_type = #tpu.core_type<tc>, window_params = [{transform_indices = @transform_0, window_bounds = array<i64: 2, 64>}, {transform_indices = @transform_1, window_bounds = array<i64: 1, 64>}, {transform_indices = @transform_2, window_bounds = array<i64: 2, 64>}]} {
    %c0 = arith.constant 0 : index
    %c0_0 = arith.constant 0 : index
    %0 = vector.load %arg2[%c0, %c0_0] : memref<2x64xf32, #tpu.memory_space<vmem>>, vector<2x64xf32>
    %c0_1 = arith.constant 0 : index
    %c0_2 = arith.constant 0 : index
    %1 = vector.load %arg3[%c0_1, %c0_2] : memref<1x64xf32, #tpu.memory_space<vmem>>, vector<1x64xf32>
    %2 = vector.broadcast %1 : vector<1x64xf32> to vector<2x64xf32>
    %3 = arith.mulf %0, %2 : vector<2x64xf32>
    %c0_3 = arith.constant 0 : index
    %c0_4 = arith.constant 0 : index
    %4 = vector.load %arg4[%c0_3, %c0_4] : memref<2x64xf32, #tpu.memory_space<vmem>>, vector<2x64xf32>
    tpu.vector_store %arg4[%c0_3, %c0_4], %3 {strides = array<i32>} : memref<2x64xf32, #tpu.memory_space<vmem>>, vector<2x64xf32>,
    return
  }
  func.func @transform_0(%arg0: i32, %arg1: i32) -> (i32, i32) {
    %c0_i32 = arith.constant 0 : i32
    return %arg0, %arg1 : i32, i32
  }
  func.func @transform_1(%arg0: i32, %arg1: i32) -> (i32, i32) {
    %c0_i32 = arith.constant 0 : i32
    %c0_i32_0 = arith.constant 0 : i32
    return %c0_i32, %arg1 : i32, i32
  }
  func.func @transform_2(%arg0: i32, %arg1: i32) -> (i32, i32) {
    %c0_i32 = arith.constant 0 : i32
    return %arg0, %arg1 : i32, i32
  }
}

</mosaic_0001>

<bundles_post_ra>
// kernel: tpu_custom_call.1
= control target key start
LH: loop header
LB: loop body
LE: loop exit
PB: predicated region body
PF: predicated region fallthrough
CT: control target
= control target key end

     0   :  { %7 = vsyncpa [#allocation3], 0  ;;  %s145_s0 = inlined_call_operand.hbm [shape: f32[2,64], index: 0, kind: input, shape index: {}]   ;;  %s146_s1 = inlined_call_operand.vmem [shape: f32[1,64], index: 1, kind: input, shape index: {}]   ;;  %s147_s2 = inlined_call_operand.hbm [shape: f32[2,64], index: 2, kind: output, shape index: {}]  }
   0x1   :  { %8 = vsyncpa [#allocation4], 0  ;;  %s101_s9 = smov [#allocation2]   ;;  %s53_s13 = scalar_lea.hbm %s145_s0, 32 }
   0x2   :  { %s15_s10 = sshll.u32 %s101_s9, 4  ;;  %p54_p0 = scmp.ne.s32.totalorder %s145_s0, %s53_s13  ;;  %s16_s10 = int_to_ptr.vmem [resolvable:$true] %s15_s10 }
   0x3   :  { %p57_p1 = scmp.lt.u32.totalorder %s53_s13, %s145_s0 }
   0x5   :  { %p59_p2 = pnand %p57_p1, %p54_p0 }
   0x7   :  { %62 = shalt.err (!%p59_p2)
}
   0x8   :  { %s63_s18 = scalar_lea.vmem %s16_s10, 32  ;;  %p68_p4 = scmp.lt.s32.totalorder %s16_s10, %s16_s10 }
   0x9   :  { %p64_p3 = scmp.ne.s32.totalorder %s16_s10, %s63_s18  ;;  %p69_p5 = scmp.lt.s32.totalorder %s63_s18, %s63_s18 }
   0xb   :  { %p70_p6 = por %p69_p5, %p68_p4 }
   0xd   :  { %p71_p7 = pnand %p70_p6, %p64_p3 }
   0xf   :  { %74 = shalt.err (!%p71_p7)
}
  0x10   :  { %18 = dma.hbm_to_vmem [thread:$0]  %s145_s0, 32, %s16_s10, [#allocation3]  }
  0x11   :  { %97 = dma.done.wait [#allocation3], 32  }
  0x12   :  { %98 = vsyncadd [#allocation3], 4294967264  ;;  %s102_s21 = smov [#allocation5]   ;;  %v24_v0 = vld [vmem:[#allocation2] sm:$0x3]  ;;  %vm33_vm0 = vcmask 517120  }
  0x13   :  { %s41_s22 = sshll.u32 %s102_s21, 4  ;;  %v50_v1 = vld [vmem:[%s146_s1] ss:$0 sm:$0xff]  ;;  %s42_s22 = int_to_ptr.vmem [resolvable:$true] %s41_s22 }
  0x14   :  { %v32_v2 = vmul.f32 %v50_v1, %v24_v0  ;;  %s75_s25 = scalar_lea.vmem %s42_s22, 32  ;;  %p80_p9 = scmp.lt.s32.totalorder %s42_s22, %s42_s22 }
  0x15   :  { %p76_p8 = scmp.ne.s32.totalorder %s42_s22, %s75_s25  ;;  %p81_p10 = scmp.lt.s32.totalorder %s75_s25, %s75_s25 }
  0x16   :  { %34 = vst.msk [vmem:[#allocation5] sm:$0x3] %vm33_vm0, %v32_v2 }
  0x17   :  { %p82_p11 = por %p81_p10, %p80_p9 }
  0x19   :  { %p83_p12 = pnand %p82_p11, %p76_p8 }
  0x1b   :  { %86 = shalt.err (!%p83_p12)
}
  0x1c   :  { %s87_s27 = scalar_lea.hbm %s147_s2, 32 }
  0x1d   :  { %p88_p13 = scmp.ne.s32.totalorder %s147_s2, %s87_s27  ;;  %p91_p0 = scmp.lt.u32.totalorder %s87_s27, %s147_s2 }
  0x1f   :  { %p93_p1 = pnand %p91_p0, %p88_p13 }
  0x21   :  { %96 = shalt.err (!%p93_p1)
}
  0x22   :  { %44 = dma.vmem_to_hbm [thread:$0]  %s42_s22, 32, %s147_s2, [#allocation4]  }
  0x23   :  { %99 = dma.done.wait [#allocation4], 32  }
  0x24   :  { %100 = vsyncadd [#allocation4], 4294967264 }
  0x25   :  { %48 = vsyncpa [#allocation3], 1 }
  0x26   :  { %49 = vsyncpa [#allocation4], 1 }

</bundles_post_ra>
